<compile_context>
chip_gen: v6e
topology: v6e:2x2x1
jax: 0.10.0
libtpu: 0.0.40
codegen_flags: <defaults>
</compile_context>

<pallas_src>
import functools

import jax
import jax.numpy as jnp
import numpy as np
from jax.experimental import pallas as pl
from jax.experimental.pallas import tpu as pltpu


def _attention_kernel(x_ref, wq_ref, wk_ref, wv_ref, wo_ref, o_ref, *,
                      bb, seq, num_heads, d_head):
    # x_ref  : (bb*seq, d_model)   flattened batch-block of tokens
    # wq_ref : (H, d_model, Dh)    pre-transposed, pre-scaled by 1/sqrt(Dh)
    # wk_ref : (H, d_model, Dh)
    # wv_ref : (H, d_model, Dh)
    # wo_ref : (H, Dh, d_model)    W_O pre-arranged per head
    # o_ref  : (bb*seq, d_model)
    H, Dh = num_heads, d_head
    d_model = x_ref.shape[-1]
    R = bb * seq          # rows in this block
    G = H * bb            # stacked (head, batch) groups

    x = x_ref[...]                                              # (R, d_model)
    # Broadcast once per grid step (cheap: leading-dim replication, no XLU).
    xb = jnp.broadcast_to(x[None], (H, R, d_model))             # (H, R, d_model)

    def bdot(a, b, dims):
        return jax.lax.dot_general(a, b, dims,
                                   preferred_element_type=jnp.float32)

    # Per-head projections as ONE batched matmul each: 'hrm,hmd->hrd'.
    proj = (((2,), (1,)), ((0,), (0,)))
    q = bdot(xb, wq_ref[...], proj).reshape(G, seq, Dh)         # already /sqrt(Dh)
    k = bdot(xb, wk_ref[...], proj).reshape(G, seq, Dh)
    v = bdot(xb, wv_ref[...], proj).reshape(G, seq, Dh)

    # scores[g,i,j] = q[g,i,:] . k[g,j,:]   ('gid,gjd->gij', no transposes)
    scores = bdot(q, k, (((2,), (2,)), ((0,), (0,))))           # (G, seq, seq)

    # Causal mask, single fill over the whole stacked tensor.  Masked value
    # matches the reference exactly: (0 - 1e10) / sqrt(d_head).
    qi = jax.lax.broadcasted_iota(jnp.int32, (seq, seq), 0)
    kj = jax.lax.broadcasted_iota(jnp.int32, (seq, seq), 1)
    neg_fill = jnp.float32(-1e10 / np.sqrt(Dh))
    s = jnp.where(qi >= kj, scores, neg_fill)                   # (G, seq, seq)

    # Single stacked softmax over the key axis.
    m = jnp.max(s, axis=-1, keepdims=True)
    e = jnp.exp(s - m)
    denom = jnp.sum(e, axis=-1, keepdims=True)                  # >= 1 always
    r = pl.reciprocal(denom, approx=True)                       # EUP slot
    r = r * (2.0 - denom * r)                                   # one Newton step
    attn = e * r

    # z[g,i,d] = sum_j attn[g,i,j] * v[g,j,d]   ('gij,gjd->gid')
    z = bdot(attn, v, (((2,), (1,)), ((0,), (0,))))             # (G, seq, Dh)

    # Output projection: per-head batched matmul then a cheap leading-axis sum.
    zh = z.reshape(H, R, Dh)
    outh = bdot(zh, wo_ref[...], (((2,), (1,)), ((0,), (0,))))  # (H, R, d_model)
    o_ref[...] = jnp.sum(outh, axis=0).astype(o_ref.dtype)


def _prepare_weights(w_q, w_k, w_v, w_o, d_head):
    """Host/XLA-side layout plumbing: per-head, pre-transposed, pre-scaled."""
    num_heads, dh, d_model = w_q.shape
    scale = jnp.float32(1.0 / np.sqrt(d_head))
    wq_h = jnp.transpose(w_q, (0, 2, 1)) * scale          # (H, d_model, Dh)
    wk_h = jnp.transpose(w_k, (0, 2, 1))                   # (H, d_model, Dh)
    wv_h = jnp.transpose(w_v, (0, 2, 1))                   # (H, d_model, Dh)
    # W_O columns are ordered (head, d_head) -> (H, Dh, d_model) per head.
    wo_h = jnp.transpose(w_o.reshape(d_model, num_heads, dh), (1, 2, 0))
    return wq_h, wk_h, wv_h, wo_h


def _batch_block(batch, seq, d_model, num_heads, d_head):
    """Split the batch across grid steps only when per-step work amortizes the
    ~0.35us grid-step overhead and the duplicated weight DMAs.  At the
    reference shapes this always collapses to a single grid step."""
    flops = 2 * batch * seq * (3 * num_heads * d_head * d_model   # QKV proj
                               + 2 * num_heads * seq * d_head     # scores + attn.v
                               + num_heads * d_head * d_model)    # output proj
    if flops < (1 << 22):
        return batch
    # Large problems: one batch element per ("parallel") grid step so multi-TC
    # parts get both cores busy and VMEM stays bounded.
    # TODO(synk): derive the TensorCore count from a static flag instead of
    # assuming a split is always worthwhile at large sizes.
    return 1


def attention_pallas(x, w_k, w_q, w_v, w_o):
    batch, seq, d_model = x.shape
    num_heads, d_head, _ = w_k.shape

    wq_h, wk_h, wv_h, wo_h = _prepare_weights(w_q, w_k, w_v, w_o, d_head)
    x2d = x.reshape(batch * seq, d_model)

    bb = _batch_block(batch, seq, d_model, num_heads, d_head)
    grid = (batch // bb,)

    kernel = functools.partial(_attention_kernel,
                               bb=bb, seq=seq,
                               num_heads=num_heads, d_head=d_head)

    out2d = pl.pallas_call(
        kernel,
        out_shape=jax.ShapeDtypeStruct((batch * seq, d_model), jnp.float32),
        grid_spec=pltpu.PrefetchScalarGridSpec(
            num_scalar_prefetch=0,
            grid=grid,
            in_specs=[
                pl.BlockSpec((bb * seq, d_model), lambda b: (b, 0)),
                pl.BlockSpec((num_heads, d_model, d_head), lambda b: (0, 0, 0)),
                pl.BlockSpec((num_heads, d_model, d_head), lambda b: (0, 0, 0)),
                pl.BlockSpec((num_heads, d_model, d_head), lambda b: (0, 0, 0)),
                pl.BlockSpec((num_heads, d_head, d_model), lambda b: (0, 0, 0)),
            ],
            out_specs=pl.BlockSpec((bb * seq, d_model), lambda b: (b, 0)),
        ),
        compiler_params=pltpu.CompilerParams(
            dimension_semantics=("parallel",)),
    )(x2d, wq_h, wk_h, wv_h, wo_h)

    return out2d.reshape(batch, seq, d_model)


def attention_ref(x, w_k, w_q, w_v, w_o, d_head):
    """Pure-JAX reference mirroring the PyTorch forward exactly."""
    seq = x.shape[-2]
    k = jnp.einsum('ihd,bpd->biph', w_k, x)
    q = jnp.einsum('ihd,bpd->biph', w_q, x)
    v = jnp.einsum('ihd,bpd->biph', w_v, x)
    scores = jnp.einsum('biph,biqh->biqp', k, q)
    mask = jnp.tril(jnp.ones((seq, seq), jnp.float32))
    scores_masked = jnp.tril(scores) - 1e10 * (1 - mask)
    attn = jax.nn.softmax(scores_masked / np.sqrt(d_head), axis=-1)
    z = jnp.einsum('biph,biqp->biqh', v, attn)
    b, i, qq, h = z.shape
    z_flat = jnp.transpose(z, (0, 2, 1, 3)).reshape(b, qq, i * h)
    return jnp.einsum('df,bqf->bqd', w_o, z_flat)


if __name__ == "__main__":
    # Small shapes consistent with the module's forward.
    batch, seq = 2, 8
    d_model, num_heads, d_head, n_ctx = 32, 4, 8, 8

    key = jax.random.PRNGKey(0)
    kx, kk, kq, kv, ko = jax.random.split(key, 5)

    x = jax.random.normal(kx, (batch, seq, d_model), jnp.float32)
    w_k = jax.random.normal(kk, (num_heads, d_head, d_model), jnp.float32) / np.sqrt(d_model)
    w_q = jax.random.normal(kq, (num_heads, d_head, d_model), jnp.float32) / np.sqrt(d_model)
    w_v = jax.random.normal(kv, (num_heads, d_head, d_model), jnp.float32) / np.sqrt(d_model)
    w_o = jax.random.normal(ko, (d_model, d_head * num_heads), jnp.float32) / np.sqrt(d_model)

    out = attention_pallas(x, w_k, w_q, w_v, w_o)
    out = jax.block_until_ready(out)

    ref = attention_ref(x, w_k, w_q, w_v, w_o, d_head)
    np.testing.assert_allclose(np.asarray(out), np.asarray(ref),
                               rtol=1e-5, atol=1e-5)
    print("KERNEL_OK")
</pallas_src>

<mosaic_0001>
module attributes {stable_mosaic.version = 11 : i64} {
  func.func @_attention_kernel(%arg0: i32, %arg1: memref<16x32xf32, #tpu.memory_space<vmem>>, %arg2: memref<4x32x8xf32, #tpu.memory_space<vmem>>, %arg3: memref<4x32x8xf32, #tpu.memory_space<vmem>>, %arg4: memref<4x32x8xf32, #tpu.memory_space<vmem>>, %arg5: memref<4x8x32xf32, #tpu.memory_space<vmem>>, %arg6: memref<16x32xf32, #tpu.memory_space<vmem>>) attributes {dimension_semantics = [#tpu.dimension_semantics<parallel>], iteration_bounds = array<i64: 1>, scalar_prefetch = 0 : i64, scratch_operands = 0 : i64, tpu.core_type = #tpu.core_type<tc>, window_params = [{transform_indices = @transform_0, window_bounds = array<i64: 16, 32>}, {pipeline_mode = #tpu.pipeline_mode<synchronous>, transform_indices = @transform_1, window_bounds = array<i64: 4, 32, 8>}, {pipeline_mode = #tpu.pipeline_mode<synchronous>, transform_indices = @transform_2, window_bounds = array<i64: 4, 32, 8>}, {pipeline_mode = #tpu.pipeline_mode<synchronous>, transform_indices = @transform_3, window_bounds = array<i64: 4, 32, 8>}, {pipeline_mode = #tpu.pipeline_mode<synchronous>, transform_indices = @transform_4, window_bounds = array<i64: 4, 8, 32>}, {transform_indices = @transform_5, window_bounds = array<i64: 16, 32>}]} {
    %c0 = arith.constant 0 : index
    %c0_0 = arith.constant 0 : index
    %0 = vector.load %arg1[%c0, %c0_0] : memref<16x32xf32, #tpu.memory_space<vmem>>, vector<16x32xf32>
    %1 = vector.shape_cast %0 : vector<16x32xf32> to vector<1x16x32xf32>
    %2 = vector.shape_cast %1 : vector<1x16x32xf32> to vector<1x16x32xf32>
    %3 = vector.broadcast %2 : vector<1x16x32xf32> to vector<4x16x32xf32>
    %c0_1 = arith.constant 0 : index
    %c0_2 = arith.constant 0 : index
    %c0_3 = arith.constant 0 : index
    %4 = vector.load %arg2[%c0_1, %c0_2, %c0_3] : memref<4x32x8xf32, #tpu.memory_space<vmem>>, vector<4x32x8xf32>
    %cst = arith.constant dense<0.000000e+00> : vector<4x16x8xf32>
    %5 = tpu.matmul %3, %4, %cst {dimension_numbers = #tpu.dot_dimension_numbers<[2], [1], [1], [2], [0, 0, 0, 1, 1, 2], [0], [0]>} : vector<4x16x32xf32>, vector<4x32x8xf32>, vector<4x16x8xf32> -> vector<4x16x8xf32>
    %6 = vector.shape_cast %5 : vector<4x16x8xf32> to vector<8x8x8xf32>
    %c0_4 = arith.constant 0 : index
    %c0_5 = arith.constant 0 : index
    %c0_6 = arith.constant 0 : index
    %7 = vector.load %arg3[%c0_4, %c0_5, %c0_6] : memref<4x32x8xf32, #tpu.memory_space<vmem>>, vector<4x32x8xf32>
    %cst_7 = arith.constant dense<0.000000e+00> : vector<4x16x8xf32>
    %8 = tpu.matmul %3, %7, %cst_7 {dimension_numbers = #tpu.dot_dimension_numbers<[2], [1], [1], [2], [0, 0, 0, 1, 1, 2], [0], [0]>} : vector<4x16x32xf32>, vector<4x32x8xf32>, vector<4x16x8xf32> -> vector<4x16x8xf32>
    %9 = vector.shape_cast %8 : vector<4x16x8xf32> to vector<8x8x8xf32>
    %c0_8 = arith.constant 0 : index
    %c0_9 = arith.constant 0 : index
    %c0_10 = arith.constant 0 : index
    %10 = vector.load %arg4[%c0_8, %c0_9, %c0_10] : memref<4x32x8xf32, #tpu.memory_space<vmem>>, vector<4x32x8xf32>
    %cst_11 = arith.constant dense<0.000000e+00> : vector<4x16x8xf32>
    %11 = tpu.matmul %3, %10, %cst_11 {dimension_numbers = #tpu.dot_dimension_numbers<[2], [1], [1], [2], [0, 0, 0, 1, 1, 2], [0], [0]>} : vector<4x16x32xf32>, vector<4x32x8xf32>, vector<4x16x8xf32> -> vector<4x16x8xf32>
    %12 = vector.shape_cast %11 : vector<4x16x8xf32> to vector<8x8x8xf32>
    %cst_12 = arith.constant dense<0.000000e+00> : vector<8x8x8xf32>
    %13 = tpu.matmul %6, %9, %cst_12 {dimension_numbers = #tpu.dot_dimension_numbers<[2], [2], [1], [1], [0, 0, 0, 1, 1, 1], [0], [0]>} : vector<8x8x8xf32>, vector<8x8x8xf32>, vector<8x8x8xf32> -> vector<8x8x8xf32>
    %14 = tpu.iota {dimensions = array<i32: 0>} : vector<8x8xi32>
    %15 = tpu.iota {dimensions = array<i32: 1>} : vector<8x8xi32>
    %16 = arith.cmpi sge, %14, %15 : vector<8x8xi32>
    %cst_13 = arith.constant -3.53553382E+9 : f32
    %17 = vector.shape_cast %16 : vector<8x8xi1> to vector<1x8x8xi1>
    %18 = vector.broadcast %17 : vector<1x8x8xi1> to vector<8x8x8xi1>
    %19 = vector.broadcast %cst_13 : f32 to vector<8x8x8xf32>
    %20 = arith.select %18, %13, %19 : vector<8x8x8xi1>, vector<8x8x8xf32>
    %cst_14 = arith.constant dense<0xFF800000> : vector<8x8xf32>
    %21 = vector.multi_reduction <maximumf>, %20, %cst_14 [2] : vector<8x8x8xf32> to vector<8x8xf32>
    %22 = vector.shape_cast %21 : vector<8x8xf32> to vector<8x8x1xf32>
    %23 = vector.broadcast %22 : vector<8x8x1xf32> to vector<8x8x8xf32>
    %24 = arith.subf %20, %23 : vector<8x8x8xf32>
    %25 = math.exp %24 : vector<8x8x8xf32>
    %cst_15 = arith.constant dense<0.000000e+00> : vector<8x8xf32>
    %26 = vector.multi_reduction <add>, %25, %cst_15 [2] : vector<8x8x8xf32> to vector<8x8xf32>
    %27 = vector.shape_cast %26 : vector<8x8xf32> to vector<8x8x1xf32>
    %28 = tpu.reciprocal %27 {approx = true} : vector<8x8x1xf32> -> vector<8x8x1xf32>
    %29 = arith.mulf %27, %28 : vector<8x8x1xf32>
    %cst_16 = arith.constant 2.000000e+00 : f32
    %30 = vector.broadcast %cst_16 : f32 to vector<8x8x1xf32>
    %31 = arith.subf %30, %29 : vector<8x8x1xf32>
    %32 = arith.mulf %28, %31 : vector<8x8x1xf32>
    %33 = vector.broadcast %32 : vector<8x8x1xf32> to vector<8x8x8xf32>
    %34 = arith.mulf %25, %33 : vector<8x8x8xf32>
    %cst_17 = arith.constant dense<0.000000e+00> : vector<8x8x8xf32>
    %35 = tpu.matmul %34, %12, %cst_17 {dimension_numbers = #tpu.dot_dimension_numbers<[2], [1], [1], [2], [0, 0, 0, 1, 1, 2], [0], [0]>} : vector<8x8x8xf32>, vector<8x8x8xf32>, vector<8x8x8xf32> -> vector<8x8x8xf32>
    %36 = vector.shape_cast %35 : vector<8x8x8xf32> to vector<4x16x8xf32>
    %c0_18 = arith.constant 0 : index
    %c0_19 = arith.constant 0 : index
    %c0_20 = arith.constant 0 : index
    %37 = vector.load %arg5[%c0_18, %c0_19, %c0_20] : memref<4x8x32xf32, #tpu.memory_space<vmem>>, vector<4x8x32xf32>
    %cst_21 = arith.constant dense<0.000000e+00> : vector<4x16x32xf32>
    %38 = tpu.matmul %36, %37, %cst_21 {dimension_numbers = #tpu.dot_dimension_numbers<[2], [1], [1], [2], [0, 0, 0, 1, 1, 2], [0], [0]>} : vector<4x16x8xf32>, vector<4x8x32xf32>, vector<4x16x32xf32> -> vector<4x16x32xf32>
    %cst_22 = arith.constant dense<0.000000e+00> : vector<16x32xf32>
    %39 = vector.multi_reduction <add>, %38, %cst_22 [0] : vector<4x16x32xf32> to vector<16x32xf32>
    %c0_23 = arith.constant 0 : index
    %c0_24 = arith.constant 0 : index
    %40 = vector.load %arg6[%c0_23, %c0_24] : memref<16x32xf32, #tpu.memory_space<vmem>>, vector<16x32xf32>
    tpu.vector_store %arg6[%c0_23, %c0_24], %39 {strides = array<i32>} : memref<16x32xf32, #tpu.memory_space<vmem>>, vector<16x32xf32>,
    return
  }
  func.func @transform_0(%arg0: i32) -> (i32, i32) {
    %c0_i32 = arith.constant 0 : i32
    %c0_i32_0 = arith.constant 0 : i32
    return %arg0, %c0_i32 : i32, i32
  }
  func.func @transform_1(%arg0: i32) -> (i32, i32, i32) {
    %c0_i32 = arith.constant 0 : i32
    %c0_i32_0 = arith.constant 0 : i32
    %c0_i32_1 = arith.constant 0 : i32
    %c0_i32_2 = arith.constant 0 : i32
    return %c0_i32, %c0_i32_0, %c0_i32_1 : i32, i32, i32
  }
  func.func @transform_2(%arg0: i32) -> (i32, i32, i32) {
    %c0_i32 = arith.constant 0 : i32
    %c0_i32_0 = arith.constant 0 : i32
    %c0_i32_1 = arith.constant 0 : i32
    %c0_i32_2 = arith.constant 0 : i32
    return %c0_i32, %c0_i32_0, %c0_i32_1 : i32, i32, i32
  }
  func.func @transform_3(%arg0: i32) -> (i32, i32, i32) {
    %c0_i32 = arith.constant 0 : i32
    %c0_i32_0 = arith.constant 0 : i32
    %c0_i32_1 = arith.constant 0 : i32
    %c0_i32_2 = arith.constant 0 : i32
    return %c0_i32, %c0_i32_0, %c0_i32_1 : i32, i32, i32
  }
  func.func @transform_4(%arg0: i32) -> (i32, i32, i32) {
    %c0_i32 = arith.constant 0 : i32
    %c0_i32_0 = arith.constant 0 : i32
    %c0_i32_1 = arith.constant 0 : i32
    %c0_i32_2 = arith.constant 0 : i32
    return %c0_i32, %c0_i32_0, %c0_i32_1 : i32, i32, i32
  }
  func.func @transform_5(%arg0: i32) -> (i32, i32) {
    %c0_i32 = arith.constant 0 : i32
    %c0_i32_0 = arith.constant 0 : i32
    return %arg0, %c0_i32 : i32, i32
  }
}

</mosaic_0001>

<bundles_post_ra>
// kernel: tpu_custom_call.1
= control target key start
LH: loop header
LB: loop body
LE: loop exit
PB: predicated region body
PF: predicated region fallthrough
CT: control target
= control target key end

     0   :  { %vm39_vm0 = vcmask 261120   ;;  %s3537_s0 = inlined_call_operand.vmem [shape: f32[16,32], index: 0, kind: input, shape index: {}]   ;;  %s3538_s1 = inlined_call_operand.vmem [shape: f32[4,32,8], index: 1, kind: input, shape index: {}]   ;;  %s3539_s2 = inlined_call_operand.vmem [shape: f32[4,32,8], index: 2, kind: input, shape index: {}]   ;;  %s3540_s3 = inlined_call_operand.vmem [shape: f32[4,32,8], index: 3, kind: input, shape index: {}]   ;;  %s3541_s4 = inlined_call_operand.vmem [shape: f32[4,8,32], index: 4, kind: input, shape index: {}]   ;;  %s3542_s5 = inlined_call_operand.hbm [shape: f32[16,32], index: 5, kind: output, shape index: {}]  }
   0x1   :  { %v26_v0 = vld [vmem:[%s3538_s1 + $0x18] sm:$0xff]  ;;  %v25_v1 = vld [vmem:[%s3538_s1 + $0x10] sm:$0xff]  ;;  %v24_v4 = vld [vmem:[%s3538_s1 + $0x8] sm:$0xff] }
   0x2   :  { %v30_v2 = vld [vmem:[%s3538_s1 + $0x38] sm:$0xff]  ;;  %2830 = vmatprep.subr.mxu0 %v26_v0  ;;  %v29_v3 = vld [vmem:[%s3538_s1 + $0x30] sm:$0xff]  ;;  %v28_v5 = vld [vmem:[%s3538_s1 + $0x28] sm:$0xff] }
   0x3   :  { %2841 = vmatprep.subr.mxu1 %v30_v2  ;;  %2831 = vmatpush3.msra.mxu0 %v26_v0  ;;  %v3177_v6 = vld [vmem:[%s3537_s0] sm:$0xff]  ;;  %v3190_v9 = vld [vmem:[%s3537_s0 + $0x8] sm:$0xff]  ;;  %v34_v10 = vld [vmem:[%s3538_s1 + $0x58] sm:$0xff] }
   0x4   :  { %2842 = vmatpush3.msra.mxu1 %v30_v2  ;;  %2832 = vmatprep.subr.mxu0 %v25_v1  ;;  %v23_v7 = vld [vmem:[%s3538_s1] sm:$0xff]  ;;  %v33_v11 = vld [vmem:[%s3538_s1 + $0x50] sm:$0xff]  ;;  %v38_v12 = vld [vmem:[%s3538_s1 + $0x78] sm:$0xff] }
   0x5   :  { %2843 = vmatprep.subr.mxu1 %v29_v3  ;;  %2833 = vmatpush3.msra.mxu0 %v25_v1  ;;  %v27_v8 = vld [vmem:[%s3538_s1 + $0x20] sm:$0xff]  ;;  %v32_v13 = vld [vmem:[%s3538_s1 + $0x48] sm:$0xff]  ;;  %v37_v14 = vld [vmem:[%s3538_s1 + $0x70] sm:$0xff] }
   0x6   :  { %2844 = vmatpush3.msra.mxu1 %v29_v3  ;;  %2834 = vmatprep.subr.mxu0 %v24_v4 }
   0x7   :  { %2845 = vmatprep.subr.mxu1 %v28_v5  ;;  %2835 = vmatpush3.msra.mxu0 %v24_v4 }
   0x8   :  { %2838 = vmatprep.mubr.msk.f32.mxu0 %vm39_vm0, %v3177_v6  ;;  %2836 = vmatprep.subr.mxu0 %v23_v7 }
   0x9   :  { %2846 = vmatpush3.msra.mxu1 %v28_v5  ;;  %2837 = vmatpush3.msra.mxu0 %v23_v7 }
   0xa   :  { %2847 = vmatprep.subr.mxu1 %v27_v8  ;;  %2839 = vmatmul.mubr.msk.f32.vlgmr.msra.gmra.mxu0 %vm39_vm0, %v3190_v9 }
   0xb   :  { %2852 = vmatprep.subr.mxu0 %v34_v10  ;;  %2848 = vmatpush3.msra.mxu1 %v27_v8 }
   0xc   :  { %2853 = vmatpush3.msra.mxu0 %v34_v10  ;;  %2849 = vmatprep.mubr.msk.f32.mxu1 %vm39_vm0, %v3177_v6 }
   0xd   :  { %2854 = vmatprep.subr.mxu0 %v33_v11 }
   0xe   :  { %10 = vsyncpa [#allocation3], 0  ;;  %2863 = vmatprep.subr.mxu1 %v38_v12  ;;  %2850 = vmatmul.mubr.msk.f32.vlgmr.msra.gmra.mxu1 %vm39_vm0, %v3190_v9  ;;  %v31_v15 = vld [vmem:[%s3538_s1 + $0x40] sm:$0xff]  ;;  %v36_v16 = vld [vmem:[%s3538_s1 + $0x68] sm:$0xff]  ;;  %v3121_v50 = vmov 0.0   ;;  %vm3122_vm1 = vmmov 0   ;;  %v1587_v8 = vlaneseq }
   0xf   :  { %2855 = vmatpush3.msra.mxu0 %v33_v11  ;;  %2864 = vmatpush3.msra.mxu1 %v38_v12  ;;  %v35_v17 = vld [vmem:[%s3538_s1 + $0x60] sm:$0xff]  ;;  %v349_v18 = vld [vmem:[%s3539_s2 + $0x18] sm:$0xff]  ;;  %v348_v19 = vld [vmem:[%s3539_s2 + $0x10] sm:$0xff]  ;;  %vm978_vm2 = vcmask 64512  }
  0x10   :  { %2856 = vmatprep.subr.mxu0 %v32_v13  ;;  %2865 = vmatprep.subr.mxu1 %v37_v14  ;;  %v353_v20 = vld [vmem:[%s3539_s2 + $0x38] sm:$0xff]  ;;  %v347_v21 = vld [vmem:[%s3539_s2 + $0x8] sm:$0xff]  ;;  %v352_v22 = vld [vmem:[%s3539_s2 + $0x30] sm:$0xff]  ;;  %v1588_v11 = vshrl.u32 %v1587_v8, 7  ;;  %v1590_v12 = vand.u32 127, %v1587_v8 }
  0x11   :  { %2857 = vmatpush3.msra.mxu0 %v32_v13  ;;  %2866 = vmatpush3.msra.mxu1 %v37_v14  ;;  %v346_v23 = vld [vmem:[%s3539_s2] sm:$0xff]  ;;  %v351_v24 = vld [vmem:[%s3539_s2 + $0x28] sm:$0xff]  ;;  %v357_v26 = vld [vmem:[%s3539_s2 + $0x58] sm:$0xff] }
  0x12   :  { %2858 = vmatprep.subr.mxu0 %v31_v15  ;;  %2867 = vmatprep.subr.mxu1 %v36_v16  ;;  %v350_v25 = vld [vmem:[%s3539_s2 + $0x20] sm:$0xff]  ;;  %v356_v27 = vld [vmem:[%s3539_s2 + $0x50] sm:$0xff]  ;;  %v361_v28 = vld [vmem:[%s3539_s2 + $0x78] sm:$0xff]  ;;  %vm3418_vm3 = vcmp.ge.s32.totalorder %v1588_v11, %v1590_v12 }
  0x13   :  { %2859 = vmatpush3.msra.mxu0 %v31_v15  ;;  %2860 = vmatprep.mubr.msk.f32.mxu0 %vm39_vm0, %v3177_v6  ;;  %v355_v29 = vld [vmem:[%s3539_s2 + $0x48] sm:$0xff]  ;;  %v360_v30 = vld [vmem:[%s3539_s2 + $0x70] sm:$0xff]  ;;  %v354_v31 = vld [vmem:[%s3539_s2 + $0x40] sm:$0xff] }
  0x14   :  { %2868 = vmatpush3.msra.mxu1 %v36_v16  ;;  %2861 = vmatmul.mubr.msk.f32.vlgmr.msra.gmra.mxu0 %vm39_vm0, %v3190_v9  ;;  %v359_v32 = vld [vmem:[%s3539_s2 + $0x68] sm:$0xff]  ;;  %v358_v33 = vld [vmem:[%s3539_s2 + $0x60] sm:$0xff]  ;;  %v669_v34 = vld [vmem:[%s3540_s3 + $0x38] sm:$0xff] }
  0x15   :  { %2869 = vmatprep.subr.mxu1 %v35_v17  ;;  %2874 = vmatprep.subr.mxu0 %v349_v18  ;;  %v665_v35 = vld [vmem:[%s3540_s3 + $0x18] sm:$0xff]  ;;  %v668_v36 = vld [vmem:[%s3540_s3 + $0x30] sm:$0xff]  ;;  %v667_v38 = vld [vmem:[%s3540_s3 + $0x28] sm:$0xff] }
  0x16   :  { %2870 = vmatpush3.msra.mxu1 %v35_v17  ;;  %2875 = vmatpush3.msra.mxu0 %v349_v18  ;;  %v664_v37 = vld [vmem:[%s3540_s3 + $0x10] sm:$0xff]  ;;  %v663_v39 = vld [vmem:[%s3540_s3 + $0x8] sm:$0xff]  ;;  %v666_v40 = vld [vmem:[%s3540_s3 + $0x20] sm:$0xff] }
  0x17   :  { %2871 = vmatprep.mubr.msk.f32.mxu1 %vm39_vm0, %v3177_v6  ;;  %2876 = vmatprep.subr.mxu0 %v348_v19  ;;  %v662_v41 = vld [vmem:[%s3540_s3] sm:$0xff]  ;;  %v677_v42 = vld [vmem:[%s3540_s3 + $0x78] sm:$0xff]  ;;  %v676_v44 = vld [vmem:[%s3540_s3 + $0x70] sm:$0xff] }
  0x18   :  { %2885 = vmatprep.subr.mxu1 %v353_v20  ;;  %2872 = vmatmul.mubr.msk.f32.vlgmr.msra.gmra.mxu1 %vm39_vm0, %v3190_v9  ;;  %v673_v43 = vld [vmem:[%s3540_s3 + $0x58] sm:$0xff]  ;;  %v672_v45 = vld [vmem:[%s3540_s3 + $0x50] sm:$0xff]  ;;  %v675_v46 = vld [vmem:[%s3540_s3 + $0x68] sm:$0xff] }
  0x19   :  { %2877 = vmatpush3.msra.mxu0 %v348_v19  ;;  %2886 = vmatpush3.msra.mxu1 %v353_v20  ;;  %v671_v47 = vld [vmem:[%s3540_s3 + $0x48] sm:$0xff]  ;;  %v674_v48 = vld [vmem:[%s3540_s3 + $0x60] sm:$0xff] }
  0x1a   :  { %2878 = vmatprep.subr.mxu0 %v347_v21  ;;  %2887 = vmatprep.subr.mxu1 %v352_v22  ;;  %v670_v49 = vld [vmem:[%s3540_s3 + $0x40] sm:$0xff] }
  0x1b   :  { %2879 = vmatpush3.msra.mxu0 %v347_v21  ;;  %2888 = vmatpush3.msra.mxu1 %v352_v22 }
  0x1c   :  { %2880 = vmatprep.subr.mxu0 %v346_v23  ;;  %2889 = vmatprep.subr.mxu1 %v351_v24 }
  0x1d   :  { %2881 = vmatpush3.msra.mxu0 %v346_v23  ;;  %2882 = vmatprep.mubr.msk.f32.mxu0 %vm39_vm0, %v3177_v6 }
  0x1e   :  { %2890 = vmatpush3.msra.mxu1 %v351_v24  ;;  %2883 = vmatmul.mubr.msk.f32.vlgmr.msra.gmra.mxu0 %vm39_vm0, %v3190_v9 }
  0x1f   :  { %2891 = vmatprep.subr.mxu1 %v350_v25  ;;  %2896 = vmatprep.subr.mxu0 %v357_v26 }
  0x20   :  { %2892 = vmatpush3.msra.mxu1 %v350_v25  ;;  %2893 = vmatprep.mubr.msk.f32.mxu1 %vm39_vm0, %v3177_v6 }
  0x21   :  { %2897 = vmatpush3.msra.mxu0 %v357_v26  ;;  %2894 = vmatmul.mubr.msk.f32.vlgmr.msra.gmra.mxu1 %vm39_vm0, %v3190_v9 }
  0x22   :  { %2898 = vmatprep.subr.mxu0 %v356_v27  ;;  %2907 = vmatprep.subr.mxu1 %v361_v28 }
  0x23   :  { %2899 = vmatpush3.msra.mxu0 %v356_v27  ;;  %2908 = vmatpush3.msra.mxu1 %v361_v28 }
  0x24   :  { %2900 = vmatprep.subr.mxu0 %v355_v29  ;;  %2909 = vmatprep.subr.mxu1 %v360_v30 }
  0x25   :  { %2901 = vmatpush3.msra.mxu0 %v355_v29  ;;  %2904 = vmatprep.mubr.msk.f32.mxu0 %vm39_vm0, %v3177_v6 }
  0x26   :  { %2902 = vmatprep.subr.mxu0 %v354_v31  ;;  %2910 = vmatpush3.msra.mxu1 %v360_v30 }
  0x27   :  { %2903 = vmatpush3.msra.mxu0 %v354_v31  ;;  %2911 = vmatprep.subr.mxu1 %v359_v32 }
  0x28   :  { %2905 = vmatmul.mubr.msk.f32.vlgmr.msra.gmra.mxu0 %vm39_vm0, %v3190_v9  ;;  %2912 = vmatpush3.msra.mxu1 %v359_v32 }
  0x29   :  { %2913 = vmatprep.subr.mxu1 %v358_v33  ;;  %2915 = vmatprep.mubr.msk.f32.mxu1 %vm39_vm0, %v3177_v6 }
  0x2a   :  { %2914 = vmatpush3.msra.mxu1 %v358_v33  ;;  %2926 = vmatprep.mubr.msk.f32.mxu0 %vm39_vm0, %v3177_v6 }
  0x2b   :  { %2916 = vmatmul.mubr.msk.f32.vlgmr.msra.gmra.mxu1 %vm39_vm0, %v3190_v9  ;;  %2929 = vmatprep.subr.mxu1 %v669_v34 }
  0x2c   :  { %2937 = vmatprep.mubr.msk.f32.mxu1 %vm39_vm0, %v3177_v6  ;;  %2918 = vmatprep.subr.mxu0 %v665_v35 }
  0x2d   :  { %2930 = vmatpush3.msra.mxu1 %v669_v34  ;;  %2919 = vmatpush3.msra.mxu0 %v665_v35 }
  0x2e   :  { %2931 = vmatprep.subr.mxu1 %v668_v36  ;;  %2920 = vmatprep.subr.mxu0 %v664_v37 }
  0x2f   :  { %2932 = vmatpush3.msra.mxu1 %v668_v36  ;;  %2921 = vmatpush3.msra.mxu0 %v664_v37 }
  0x30   :  { %2933 = vmatprep.subr.mxu1 %v667_v38  ;;  %2922 = vmatprep.subr.mxu0 %v663_v39 }
  0x31   :  { %2934 = vmatpush3.msra.mxu1 %v667_v38  ;;  %2923 = vmatpush3.msra.mxu0 %v663_v39 }
  0x32   :  { %2935 = vmatprep.subr.mxu1 %v666_v40  ;;  %2924 = vmatprep.subr.mxu0 %v662_v41 }
  0x33   :  { %2936 = vmatpush3.msra.mxu1 %v666_v40  ;;  %2925 = vmatpush3.msra.mxu0 %v662_v41 }
  0x34   :  { %2938 = vmatmul.mubr.msk.f32.vlgmr.msra.gmra.mxu1 %vm39_vm0, %v3190_v9  ;;  %2951 = vmatprep.subr.mxu1 %v677_v42 }
  0x35   :  { %2927 = vmatmul.mubr.msk.f32.vlgmr.msra.gmra.mxu0 %vm39_vm0, %v3190_v9  ;;  %2940 = vmatprep.subr.mxu0 %v673_v43 }
  0x36   :  { %2952 = vmatpush3.msra.mxu1 %v677_v42  ;;  %2941 = vmatpush3.msra.mxu0 %v673_v43 }
  0x37   :  { %2953 = vmatprep.subr.mxu1 %v676_v44  ;;  %2959 = vmatprep.mubr.msk.f32.mxu1 %vm39_vm0, %v3177_v6 }
  0x38   :  { %2954 = vmatpush3.msra.mxu1 %v676_v44  ;;  %2942 = vmatprep.subr.mxu0 %v672_v45 }
  0x39   :  { %2955 = vmatprep.subr.mxu1 %v675_v46  ;;  %2943 = vmatpush3.msra.mxu0 %v672_v45 }
  0x3a   :  { %2956 = vmatpush3.msra.mxu1 %v675_v46  ;;  %2944 = vmatprep.subr.mxu0 %v671_v47 }
  0x3b   :  { %2957 = vmatprep.subr.mxu1 %v674_v48  ;;  %2945 = vmatpush3.msra.mxu0 %v671_v47 }
  0x3c   :  { %2958 = vmatpush3.msra.mxu1 %v674_v48  ;;  %2946 = vmatprep.subr.mxu0 %v670_v49 }
  0x3d   :  { %2948 = vmatprep.mubr.msk.f32.mxu0 %vm39_vm0, %v3177_v6  ;;  %2947 = vmatpush3.msra.mxu0 %v670_v49 }
  0x3e   :  { %2960 = vmatmul.mubr.msk.f32.vlgmr.msra.gmra.mxu1 %vm39_vm0, %v3190_v9  ;;  %2967 = vmatprep.subr.mxu1 %v3121_v50 }
  0x3f   :  { %2949 = vmatmul.mubr.msk.f32.vlgmr.msra.gmra.mxu0 %vm39_vm0, %v3190_v9  ;;  %2962 = vmatprep.subr.mxu0 %v3121_v50 }
  0x40   :  { %2969 = vmatprep.mubr.msk.f32.mxu1 %vm3122_vm1, %v3121_v50  ;;  %2964 = vmatprep.mubr.msk.f32.mxu0 %vm3122_vm1, %v3121_v50 }
  0xca   :  { %v2840_v51 = vpop.f32.mrf.mxu0 }
  0xcc   :  { %v112_v53 = vpop.f32.mrf.mxu0 }
  0xce   :  { %v2851_v52 = vpop.f32.mrf.mxu1 }
  0xd0   :  { %v187_v55 = vpop.f32.mrf.mxu1 }
  0xd4   :  { %v2862_v54 = vpop.f32.mrf.mxu0 }
  0xd6   :  { %v262_v57 = vpop.f32.mrf.mxu0 }
  0xd8   :  { %v2873_v56 = vpop.f32.mrf.mxu1 }
  0xda   :  { %v337_v59 = vpop.f32.mrf.mxu1 }
  0xde   :  { %v2884_v58 = vpop.f32.mrf.mxu0 }
  0xdf   :  { %2968 = vmatpush3.xpose.msk.msra.mxu1 %vm978_vm2, %v2884_v58 }
  0xe0   :  { %v428_v60 = vpop.f32.mrf.mxu0  ;;  %2977 = vmatprep.subr.mxu1 %v3121_v50 }
  0xe1   :  { %v2895_v61 = vpop.f32.mrf.mxu1  ;;  %2963 = vmatpush3.xpose.msk.msra.mxu0 %vm978_vm2, %v428_v60 }
  0xe2   :  { %2970 = vmatmul.mubr.msk.f32.vlgmr.msra.gmra.mxu1 %vm978_vm2, %v2840_v51  ;;  %2972 = vmatprep.subr.mxu0 %v3121_v50 }
  0xe3   :  { %2978 = vmatpush3.xpose.msk.msra.mxu1 %vm978_vm2, %v2895_v61  ;;  %2979 = vmatprep.mubr.msk.f32.mxu1 %vm3122_vm1, %v3121_v50  ;;  %v503_v62 = vpop.f32.mrf.mxu1 }
  0xe4   :  { %2965 = vmatmul.mubr.msk.f32.vlgmr.msra.gmra.mxu0 %vm978_vm2, %v112_v53  ;;  %2987 = vmatprep.subr.mxu1 %v3121_v50 }
  0xe5   :  { %2973 = vmatpush3.xpose.msk.msra.mxu0 %vm978_vm2, %v503_v62  ;;  %2974 = vmatprep.mubr.msk.f32.mxu0 %vm3122_vm1, %v3121_v50 }
  0xe6   :  { %2980 = vmatmul.mubr.msk.f32.vlgmr.msra.gmra.mxu1 %vm978_vm2, %v2851_v52  ;;  %2982 = vmatprep.subr.mxu0 %v3121_v50 }
  0xe7   :  { %2989 = vmatprep.mubr.msk.f32.mxu1 %vm3122_vm1, %v3121_v50 }
  0xe8   :  { %v2906_v63 = vpop.f32.mrf.mxu0  ;;  %2975 = vmatmul.mubr.msk.f32.vlgmr.msra.gmra.mxu0 %vm978_vm2, %v187_v55 }
  0xe9   :  { %2988 = vmatpush3.xpose.msk.msra.mxu1 %vm978_vm2, %v2906_v63  ;;  %2984 = vmatprep.mubr.msk.f32.mxu0 %vm3122_vm1, %v3121_v50 }
  0xea   :  { %v578_v0 = vpop.f32.mrf.mxu0  ;;  %2997 = vmatprep.subr.mxu1 %v3121_v50 }
  0xeb   :  { %2983 = vmatpush3.xpose.msk.msra.mxu0 %vm978_vm2, %v578_v0  ;;  %v2917_v1 = vpop.f32.mrf.mxu1 }
  0xec   :  { %2990 = vmatmul.mubr.msk.f32.vlgmr.msra.gmra.mxu1 %vm978_vm2, %v2862_v54  ;;  %2992 = vmatprep.subr.mxu0 %v3121_v50 }
  0xed   :  { %2998 = vmatpush3.xpose.msk.msra.mxu1 %vm978_vm2, %v2917_v1  ;;  %v653_v2 = vpop.f32.mrf.mxu1  ;;  %2999 = vmatprep.mubr.msk.f32.mxu1 %vm3122_vm1, %v3121_v50 }
  0xee   :  { %2985 = vmatmul.mubr.msk.f32.vlgmr.msra.gmra.mxu0 %vm978_vm2, %v262_v57  ;;  %3007 = vmatprep.subr.mxu1 %v3121_v50 }
  0xef   :  { %2993 = vmatpush3.xpose.msk.msra.mxu0 %vm978_vm2, %v653_v2  ;;  %2994 = vmatprep.mubr.msk.f32.mxu0 %vm3122_vm1, %v3121_v50 }
  0xf0   :  { %3000 = vmatmul.mubr.msk.f32.vlgmr.msra.gmra.mxu1 %vm978_vm2, %v2873_v56  ;;  %3002 = vmatprep.subr.mxu0 %v3121_v50 }
  0xf1   :  { %3009 = vmatprep.mubr.msk.f32.mxu1 %vm3122_vm1, %v3121_v50 }
  0xf2   :  { %2995 = vmatmul.mubr.msk.f32.vlgmr.msra.gmra.mxu0 %vm978_vm2, %v337_v59 }
  0xf3   :  { %3004 = vmatprep.mubr.msk.f32.mxu0 %vm3122_vm1, %v3121_v50 }
  0xf4   :  { %v3406_v5 = vpop.f32.mrf.mxu1 }
  0xf5   :  { %v2928_v3 = vpop.f32.mrf.mxu0 }
  0xf6   :  { %3008 = vmatpush3.msra.mxu1 %v2928_v3  ;;  %v3408_v6 = vpop.f32.mrf.mxu1 }
  0xf7   :  { %v744_v4 = vpop.f32.mrf.mxu0  ;;  %3017 = vmatprep.subr.mxu1 %v3121_v50 }
  0xf8   :  { %3003 = vmatpush3.msra.mxu0 %v744_v4 }
  0xf9   :  { %3012 = vmatprep.subr.mxu0 %v3121_v50 }
  0xfe   :  { %v3410_v7 = vpop.f32.mrf.mxu1 }
  0xff   :  { %v3412_v9 = vpop.f32.mrf.mxu0 }
 0x100   :  { %v3414_v10 = vpop.f32.mrf.mxu1 }
 0x101   :  { %v3416_v13 = vpop.f32.mrf.mxu0 }
 0x1a2   :  { %v1127_v14 = vpop.f32.mrf.mxu1 }
 0x1a3   :  { %v1595_v22 = vsel %vm3418_vm3, %v1127_v14, -3.5355338e+09 }
 0x1a4   :  { %v1051_v16 = vpop.f32.mrf.mxu0  ;;  %v2971_v17 = vpop.f32.mrf.mxu1  ;;  %v1605_v27 = vsel %vm978_vm2, %v1595_v22, -inf }
 0x1a5   :  { %v1594_v18 = vsel %vm3418_vm3, %v1051_v16, -3.5355338e+09 }
 0x1a6   :  { %v2966_v19 = vpop.f32.mrf.mxu0  ;;  %v1279_v20 = vpop.f32.mrf.mxu1  ;;  %v1602_v21 = vsel %vm978_vm2, %v1594_v18, -inf }
 0x1a7   :  { %1603 = vmax.xlane.f32.xlu0 %v1602_v21  ;;  %v1597_v29 = vsel %vm3418_vm3, %v1279_v20, -3.5355338e+09 }
 0x1a8   :  { %v1203_v23 = vpop.f32.mrf.mxu0  ;;  %v2981_v24 = vpop.f32.mrf.mxu1  ;;  %v1611_v33 = vsel %vm978_vm2, %v1597_v29, -inf }
 0x1a9   :  { %v1596_v25 = vsel %vm3418_vm3, %v1203_v23, -3.5355338e+09 }
 0x1aa   :  { %v2976_v26 = vpop.f32.mrf.mxu0  ;;  %v1608_v28 = vsel %vm978_vm2, %v1596_v25, -inf }
 0x1ab   :  { %1606 = vmax.xlane.f32.xlu0 %v1605_v27  ;;  %1609 = vmax.xlane.f32.xlu1 %v1608_v28 }
 0x1ac   :  { %v1431_v30 = vpop.f32.mrf.mxu1 }
 0x1ad   :  { %v1599_v34 = vsel %vm3418_vm3, %v1431_v30, -3.5355338e+09 }
 0x1ae   :  { %v1355_v31 = vpop.f32.mrf.mxu0  ;;  %v2991_v32 = vpop.f32.mrf.mxu1  ;;  %v1617_v41 = vsel %vm978_vm2, %v1599_v34, -inf }
 0x1af   :  { %v1598_v35 = vsel %vm3418_vm3, %v1355_v31, -3.5355338e+09  ;;  %1612 = vmax.xlane.f32.xlu1 %v1611_v33 }
 0x1b0   :  { %v2986_v36 = vpop.f32.mrf.mxu0  ;;  %v1583_v37 = vpop.f32.mrf.mxu1  ;;  %v1614_v38 = vsel %vm978_vm2, %v1598_v35, -inf }
 0x1b1   :  { %1615 = vmax.xlane.f32.xlu0 %v1614_v38  ;;  %v1601_v42 = vsel %vm3418_vm3, %v1583_v37, -3.5355338e+09 }
 0x1b2   :  { %v1507_v39 = vpop.f32.mrf.mxu0  ;;  %v3001_v40 = vpop.f32.mrf.mxu1  ;;  %v1623_v46 = vsel %vm978_vm2, %v1601_v42, -inf }
 0x1b3   :  { %v1600_v43 = vsel %vm3418_vm3, %v1507_v39, -3.5355338e+09  ;;  %1618 = vmax.xlane.f32.xlu1 %v1617_v41 }
 0x1b4   :  { %v2996_v44 = vpop.f32.mrf.mxu0  ;;  %v1620_v45 = vsel %vm978_vm2, %v1600_v43, -inf }
 0x1b5   :  { %1621 = vmax.xlane.f32.xlu0 %v1620_v45 }
 0x1b7   :  { %1624 = vmax.xlane.f32.xlu1 %v1623_v46 }
 0x230   :  { %v1604_v47 = vpop.xlane.xlu0 %1603 }
 0x231   :  { %v1626_v48 = vsub.f32 %v1594_v18, %v1604_v47 }
 0x233   :  { %v1634_v49 = vmul.f32 1.442695, %v1626_v48 }
 0x234   :  { %v1607_v51 = vpop.xlane.xlu0 %1606  ;;  %v1610_v52 = vpop.xlane.xlu1 %1609 }
 0x235   :  { %3067 = vpow2.f32 %v1634_v49  ;;  %v1627_v53 = vsub.f32 %v1595_v22, %v1607_v51  ;;  %v1628_v54 = vsub.f32 %v1596_v25, %v1610_v52 }
 0x237   :  { %v1636_v55 = vmul.f32 1.442695, %v1627_v53  ;;  %v1638_v56 = vmul.f32 1.442695, %v1628_v54 }
 0x238   :  { %v1613_v57 = vpop.xlane.xlu1 %1612 }
 0x239   :  { %3069 = vpow2.f32 %v1636_v55  ;;  %v1629_v58 = vsub.f32 %v1597_v29, %v1613_v57 }
 0x23a   :  { %3071 = vpow2.f32 %v1638_v56  ;;  %v1616_v59 = vpop.xlane.xlu0 %1615 }
 0x23b   :  { %v1640_v60 = vmul.f32 1.442695, %v1629_v58  ;;  %v1630_v61 = vsub.f32 %v1598_v35, %v1616_v59 }
 0x23c   :  { %v1619_v62 = vpop.xlane.xlu1 %1618 }
 0x23d   :  { %3073 = vpow2.f32 %v1640_v60  ;;  %v1642_v63 = vmul.f32 1.442695, %v1630_v61  ;;  %v1631_v0 = vsub.f32 %v1599_v34, %v1619_v62 }
 0x23e   :  { %v1622_v1 = vpop.xlane.xlu0 %1621 }
 0x23f   :  { %3075 = vpow2.f32 %v1642_v63  ;;  %v1644_v2 = vmul.f32 1.442695, %v1631_v0  ;;  %v1632_v3 = vsub.f32 %v1600_v43, %v1622_v1 }
 0x240   :  { %v1625_v4 = vpop.xlane.xlu1 %1624 }
 0x241   :  { %3077 = vpow2.f32 %v1644_v2  ;;  %v1646_v8 = vmul.f32 1.442695, %v1632_v3  ;;  %v1633_v11 = vsub.f32 %v1601_v42, %v1625_v4 }
 0x242   :  { %v3068_v12 = vpop.eup %3067 }
 0x243   :  { %3079 = vpow2.f32 %v1646_v8  ;;  %v1648_v14 = vmul.f32 1.442695, %v1633_v11  ;;  %v1650_v15 = vsel %vm978_vm2, %v3068_v12, 0.0 }
 0x244   :  { %1651 = vadd.xlane.f32.xlu0 %v1650_v15 }
 0x245   :  { %3081 = vpow2.f32 %v1648_v14 }
 0x246   :  { %v3070_v16 = vpop.eup %3069 }
 0x247   :  { %v3072_v17 = vpop.eup %3071  ;;  %v1653_v18 = vsel %vm978_vm2, %v3070_v16, 0.0 }
 0x248   :  { %1654 = vadd.xlane.f32.xlu1 %v1653_v18  ;;  %v1656_v19 = vsel %vm978_vm2, %v3072_v17, 0.0 }
 0x249   :  { %1657 = vadd.xlane.f32.xlu0 %v1656_v19 }
 0x24a   :  { %v3449_v20 = vpop.eup %3073 }
 0x24b   :  { %v1659_v21 = vsel %vm978_vm2, %v3449_v20, 0.0 }
 0x24c   :  { %v3453_v22 = vpop.eup %3075  ;;  %1660 = vadd.xlane.f32.xlu1 %v1659_v21 }
 0x24d   :  { %v1662_v23 = vsel %vm978_vm2, %v3453_v22, 0.0 }
 0x24e   :  { %v3457_v24 = vpop.eup %3077  ;;  %1663 = vadd.xlane.f32.xlu0 %v1662_v23 }
 0x24f   :  { %v1665_v25 = vsel %vm978_vm2, %v3457_v24, 0.0 }
 0x250   :  { %v3461_v26 = vpop.eup %3079  ;;  %1666 = vadd.xlane.f32.xlu1 %v1665_v25 }
 0x251   :  { %v1668_v27 = vsel %vm978_vm2, %v3461_v26, 0.0 }
 0x252   :  { %v3465_v28 = vpop.eup %3081  ;;  %1669 = vadd.xlane.f32.xlu0 %v1668_v27 }
 0x253   :  { %v1671_v29 = vsel %vm978_vm2, %v3465_v28, 0.0 }
 0x254   :  { %1672 = vadd.xlane.f32.xlu1 %v1671_v29 }
 0x2cd   :  { %v1652_v30 = vpop.xlane.xlu0 %1651 }
 0x2ce   :  { %3083 = vrcp.f32 %v1652_v30 }
 0x2d1   :  { %v1655_v31 = vpop.xlane.xlu1 %1654 }
 0x2d2   :  { %3085 = vrcp.f32 %v1655_v31  ;;  %v1658_v32 = vpop.xlane.xlu0 %1657 }
 0x2d3   :  { %3087 = vrcp.f32 %v1658_v32 }
 0x2d5   :  { %v1661_v33 = vpop.xlane.xlu1 %1660 }
 0x2d6   :  { %3089 = vrcp.f32 %v1661_v33 }
 0x2d7   :  { %v1664_v34 = vpop.xlane.xlu0 %1663 }
 0x2d8   :  { %3091 = vrcp.f32 %v1664_v34 }
 0x2d9   :  { %v1667_v35 = vpop.xlane.xlu1 %1666 }
 0x2da   :  { %3093 = vrcp.f32 %v1667_v35 }
 0x2db   :  { %v3084_v36 = vpop.eup %3083  ;;  %v1670_v37 = vpop.xlane.xlu0 %1669 }
 0x2dc   :  { %v1682_v38 = vmul.f32 %v3084_v36, %v1652_v30  ;;  %3095 = vrcp.f32 %v1670_v37 }
 0x2dd   :  { %v1673_v39 = vpop.xlane.xlu1 %1672 }
 0x2de   :  { %v1690_v40 = vsub.f32 2.0, %v1682_v38  ;;  %3097 = vrcp.f32 %v1673_v39 }
 0x2df   :  { %v3086_v41 = vpop.eup %3085 }
 0x2e0   :  { %v3088_v42 = vpop.eup %3087  ;;  %v1698_v43 = vmul.f32 %v3084_v36, %v1690_v40  ;;  %v1683_v44 = vmul.f32 %v3086_v41, %v1655_v31 }
 0x2e1   :  { %v1684_v45 = vmul.f32 %v3088_v42, %v1658_v32 }
 0x2e2   :  { %v1706_v46 = vmul.f32 %v3068_v12, %v1698_v43  ;;  %v1691_v47 = vsub.f32 2.0, %v1683_v44 }
 0x2e3   :  { %v3090_v48 = vpop.eup %3089  ;;  %v1692_v49 = vsub.f32 2.0, %v1684_v45 }
 0x2e4   :  { %v1699_v51 = vmul.f32 %v3086_v41, %v1691_v47  ;;  %v1685_v52 = vmul.f32 %v3090_v48, %v1661_v33  ;;  %3005 = vmatmul.mubr.msk.f32.vlgmr.msra.gmra.mxu0 %vm978_vm2, %v1706_v46 }
 0x2e5   :  { %v3092_v53 = vpop.eup %3091  ;;  %v1700_v54 = vmul.f32 %v3088_v42, %v1692_v49  ;;  %3013 = vmatpush3.msra.mxu0 %v3408_v6  ;;  %3014 = vmatprep.mubr.msk.f32.mxu0 %vm3122_vm1, %v3121_v50 }
 0x2e6   :  { %v1707_v55 = vmul.f32 %v3070_v16, %v1699_v51  ;;  %v1693_v56 = vsub.f32 2.0, %v1685_v52  ;;  %v1686_v57 = vmul.f32 %v3092_v53, %v1664_v34  ;;  %3022 = vmatprep.subr.mxu0 %v3121_v50 }
 0x2e7   :  { %v3094_v58 = vpop.eup %3093  ;;  %v1708_v59 = vmul.f32 %v3072_v17, %v1700_v54  ;;  %v2299_v17 = vld [vmem:[%s3541_s4 + $0x8] sm:$0xff] }
 0x2e8   :  { %v1701_v60 = vmul.f32 %v3090_v48, %v1693_v56  ;;  %v1694_v61 = vsub.f32 2.0, %v1686_v57  ;;  %v1687_v62 = vmul.f32 %v3094_v58, %v1667_v35  ;;  %3010 = vmatmul.mubr.msk.f32.vlgmr.msra.gmra.mxu1 %vm978_vm2, %v1707_v55 }
 0x2e9   :  { %v3096_v63 = vpop.eup %3095  ;;  %3015 = vmatmul.mubr.msk.f32.vlgmr.msra.gmra.mxu0 %vm978_vm2, %v1708_v59  ;;  %3018 = vmatpush3.msra.mxu1 %v3406_v5 }
 0x2ea   :  { %v1709_v6 = vmul.f32 %v3449_v20, %v1701_v60  ;;  %v1702_v0 = vmul.f32 %v3092_v53, %v1694_v61  ;;  %v1695_v1 = vsub.f32 2.0, %v1687_v62  ;;  %v1688_v2 = vmul.f32 %v3096_v63, %v1670_v37  ;;  %3023 = vmatpush3.msra.mxu0 %v3416_v13  ;;  %3019 = vmatprep.mubr.msk.f32.mxu1 %vm3122_vm1, %v3121_v50 }
 0x2eb   :  { %v3098_v3 = vpop.eup %3097  ;;  %3024 = vmatprep.mubr.msk.f32.mxu0 %vm3122_vm1, %v3121_v50  ;;  %3027 = vmatprep.subr.mxu1 %v3121_v50 }
 0x2ec   :  { %v1710_v4 = vmul.f32 %v3453_v22, %v1702_v0  ;;  %v1703_v8 = vmul.f32 %v3094_v58, %v1695_v1  ;;  %v1696_v5 = vsub.f32 2.0, %v1688_v2  ;;  %v1689_v11 = vmul.f32 %v3098_v3, %v1673_v39  ;;  %3032 = vmatprep.subr.mxu0 %v3121_v50  ;;  %3020 = vmatmul.mubr.msk.f32.vlgmr.msra.gmra.mxu1 %vm978_vm2, %v1709_v6 }
 0x2ed   :  { %3028 = vmatpush3.msra.mxu1 %v3412_v9  ;;  %3029 = vmatprep.mubr.msk.f32.mxu1 %vm3122_vm1, %v3121_v50 }
 0x2ee   :  { %v1711_v13 = vmul.f32 %v3457_v24, %v1703_v8  ;;  %v1704_v12 = vmul.f32 %v3096_v63, %v1696_v5  ;;  %v1697_v14 = vsub.f32 2.0, %v1689_v11  ;;  %3025 = vmatmul.mubr.msk.f32.vlgmr.msra.gmra.mxu0 %vm978_vm2, %v1710_v4  ;;  %3037 = vmatprep.subr.mxu1 %v3121_v50 }
 0x2ef   :  { %3033 = vmatpush3.msra.mxu0 %v3414_v10  ;;  %3034 = vmatprep.mubr.msk.f32.mxu0 %vm3122_vm1, %v3121_v50  ;;  %v2298_v10 = vld [vmem:[%s3541_s4] sm:$0xff] }
 0x2f0   :  { %v1712_v15 = vmul.f32 %v3461_v26, %v1704_v12  ;;  %v1705_v16 = vmul.f32 %v3098_v3, %v1697_v14  ;;  %3030 = vmatmul.mubr.msk.f32.vlgmr.msra.gmra.mxu1 %vm978_vm2, %v1711_v13  ;;  %3042 = vmatprep.subr.mxu0 %v2298_v10 }
 0x2f1   :  { %3038 = vmatpush3.msra.mxu1 %v3410_v7  ;;  %3039 = vmatprep.mubr.msk.f32.mxu1 %vm3122_vm1, %v3121_v50  ;;  %v2300_v50 = vld [vmem:[%s3541_s4 + $0x10] sm:$0xff]  ;;  %v2301_v7 = vld [vmem:[%s3541_s4 + $0x18] sm:$0xff]  ;;  %s3123_s4 = smov [#allocation2]  }
 0x2f2   :  { %v1713_v9 = vmul.f32 %v3465_v28, %v1705_v16  ;;  %3035 = vmatmul.mubr.msk.f32.vlgmr.msra.gmra.mxu0 %vm978_vm2, %v1712_v15  ;;  %3047 = vmatprep.subr.mxu1 %v2299_v17  ;;  %s2647_s17 = sshll.u32 %s3123_s4, 4  ;;  %s2648_s17 = int_to_ptr.vmem [resolvable:$true] %s2647_s17 }
 0x2f3   :  { %3043 = vmatpush3.msra.mxu0 %v2298_v10  ;;  %s3099_s18 = scalar_lea.vmem %s2648_s17, 256  ;;  %p3104_p1 = scmp.lt.s32.totalorder %s2648_s17, %s2648_s17 }
 0x2f4   :  { %3040 = vmatmul.mubr.msk.f32.vlgmr.msra.gmra.mxu1 %vm978_vm2, %v1713_v9  ;;  %3052 = vmatprep.subr.mxu0 %v2300_v50  ;;  %p3100_p0 = scmp.ne.s32.totalorder %s2648_s17, %s3099_s18  ;;  %p3105_p2 = scmp.lt.s32.totalorder %s3099_s18, %s3099_s18 }
 0x2f5   :  { %3048 = vmatpush3.msra.mxu1 %v2299_v17 }
 0x2f6   :  { %3057 = vmatprep.subr.mxu1 %v2301_v7  ;;  %p3106_p3 = por %p3105_p2, %p3104_p1 }
 0x2f8   :  { %p3107_p4 = pnand %p3106_p3, %p3100_p0 }
 0x3a4   :  { %v1783_v18 = vpop.f32.mrf.mxu0 }
 0x3a5   :  { %3044 = vmatprep.mubr.msk.f32.mxu0 %vm978_vm2, %v1783_v18 }
 0x3a6   :  { %v3006_v19 = vpop.f32.mrf.mxu0 }
 0x3a8   :  { %v1856_v20 = vpop.f32.mrf.mxu1 }
 0x3a9   :  { %v1929_v21 = vpop.f32.mrf.mxu0  ;;  %3045 = vmatmul.mubr.msk.f32.vlgmr.msra.gmra.mxu0 %vm978_vm2, %v1856_v20 }
 0x3aa   :  { %3049 = vmatprep.mubr.msk.f32.mxu1 %vm978_vm2, %v1929_v21  ;;  %v3011_v22 = vpop.f32.mrf.mxu1  ;;  %3053 = vmatpush3.msra.mxu0 %v2300_v50 }
 0x3ab   :  { %v3016_v23 = vpop.f32.mrf.mxu0 }
 0x3ac   :  { %v2002_v24 = vpop.f32.mrf.mxu1 }
 0x3ad   :  { %3050 = vmatmul.mubr.msk.f32.vlgmr.msra.gmra.mxu1 %vm978_vm2, %v2002_v24 }
 0x3ae   :  { %v2075_v25 = vpop.f32.mrf.mxu0  ;;  %v3021_v26 = vpop.f32.mrf.mxu1  ;;  %3058 = vmatpush3.msra.mxu1 %v2301_v7 }
 0x3af   :  { %3054 = vmatprep.mubr.msk.f32.mxu0 %vm978_vm2, %v2075_v25 }
 0x3b0   :  { %v3026_v27 = vpop.f32.mrf.mxu0  ;;  %v2148_v28 = vpop.f32.mrf.mxu1 }
 0x3b1   :  { %3055 = vmatmul.mubr.msk.f32.vlgmr.msra.gmra.mxu0 %vm978_vm2, %v2148_v28 }
 0x3b2   :  { %v2221_v29 = vpop.f32.mrf.mxu0  ;;  %v3031_v30 = vpop.f32.mrf.mxu1 }
 0x3b3   :  { %3059 = vmatprep.mubr.msk.f32.mxu1 %vm978_vm2, %v2221_v29 }
 0x3b4   :  { %v3036_v31 = vpop.f32.mrf.mxu0  ;;  %v2294_v32 = vpop.f32.mrf.mxu1 }
 0x3b5   :  { %3060 = vmatmul.mubr.msk.f32.vlgmr.msra.gmra.mxu1 %vm978_vm2, %v2294_v32 }
 0x3b6   :  { %v3041_v33 = vpop.f32.mrf.mxu1 }
 0x469   :  { %v3046_v34 = vpop.f32.mrf.mxu0 }
 0x46a   :  { %v2633_v40 = vsel %vm39_vm0, %v3046_v34, 0.0 }
 0x46b   :  { %v2374_v36 = vpop.f32.mrf.mxu0 }
 0x46c   :  { %v2626_v45 = vsel %vm39_vm0, %v2374_v36, 0.0 }
 0x46d   :  { %v3051_v35 = vpop.f32.mrf.mxu1 }
 0x46e   :  { %v2634_v38 = vsel %vm39_vm0, %v3051_v35, 0.0 }
 0x46f   :  { %v2455_v37 = vpop.f32.mrf.mxu1  ;;  %v2635_v43 = vadd.f32 %v2634_v38, %v2633_v40 }
 0x470   :  { %v2627_v41 = vsel %vm39_vm0, %v2455_v37, 0.0 }
 0x471   :  { %v3056_v39 = vpop.f32.mrf.mxu0  ;;  %v2628_v47 = vadd.f32 %v2627_v41, %v2626_v45 }
 0x472   :  { %v2636_v42 = vsel %vm39_vm0, %v3056_v39, 0.0 }
 0x473   :  { %v2536_v44 = vpop.f32.mrf.mxu0  ;;  %v2637_v48 = vadd.f32 %v2636_v42, %v2635_v43 }
 0x474   :  { %v2629_v46 = vsel %vm39_vm0, %v2536_v44, 0.0 }
 0x475   :  { %v3061_v49 = vpop.f32.mrf.mxu1  ;;  %v2630_v52 = vadd.f32 %v2629_v46, %v2628_v47 }
 0x476   :  { %v2638_v51 = vsel %vm39_vm0, %v3061_v49, 0.0 }
 0x477   :  { %v2639_v53 = vadd.f32 %v2638_v51, %v2637_v48  ;;  %v2617_v54 = vpop.f32.mrf.mxu1 }
 0x478   :  { %v2631_v55 = vsel %vm39_vm0, %v2617_v54, 0.0 }
 0x479   :  { %2641 = vst.msk [vmem:[#allocation2 + $0x8] sm:$0xff] %vm39_vm0, %v2639_v53  ;;  %v2632_v56 = vadd.f32 %v2631_v55, %v2630_v52 }
 0x47b   :  { %2640 = vst.msk [vmem:[#allocation2] sm:$0xff] %vm39_vm0, %v2632_v56 }
 0x47c   :  { %3110 = shalt.err (!%p3107_p4)
}
 0x47d   :  { %s3124_s0 = smov 128   ;;  %s3125_s19 = smov 8  }
 0x47e   :  { %2653 = dma.vmem_to_hbm [thread:$0]  %s2648_s17, 256, %s3542_s5, [#allocation3], %s3124_s0, %s3124_s0, %s3125_s19  }
 0x47f   :  { %3119 = dma.done.wait [#allocation3], 256  }
 0x480   :  { %3120 = vsyncadd [#allocation3], 4294967040 }
 0x481   :  { %2657 = vsyncpa [#allocation3], 1 }

</bundles_post_ra>
